<compile_context>
chip_gen: v6e
topology: v6e:2x2x1
jax: 0.10.0
libtpu: 0.0.40
codegen_flags: <defaults>
</compile_context>

<pallas_src>
import jax
import jax.numpy as jnp
from jax import lax
from jax.experimental import pallas as pl
from jax.experimental.pallas import tpu as pltpu

BN_EPS = 1e-5


# --------------------------------------------------------------------------- #
# Kernel
# --------------------------------------------------------------------------- #
def _mlp_kernel(x_ref, w1_ref, b1_ref, w2_ref, b2_ref, w3_ref, b3_ref, out_ref):
    """x tile: [TE, 2H] -> out tile: [TE, 2] (col 0 = tra head, col 1 = trb head)."""
    mxu_dtype = w1_ref.dtype

    # lin1 (+ folded bn1) -> relu    (dropout1 == identity in eval)
    h = jnp.dot(x_ref[...], w1_ref[...], preferred_element_type=jnp.float32)
    h = jnp.maximum(h + b1_ref[...], 0.0)

    # lin2 (+ folded bn2) -> relu    (dropout2 == identity in eval)
    h = jnp.dot(h.astype(mxu_dtype), w2_ref[...], preferred_element_type=jnp.float32)
    h = jnp.maximum(h + b2_ref[...], 0.0)

    # fused lin3_tra | lin3_trb head ([256, 2] weight -> one MXU pass)
    out = jnp.dot(h.astype(mxu_dtype), w3_ref[...], preferred_element_type=jnp.float32)
    out_ref[...] = (out + b3_ref[...]).astype(out_ref.dtype)


# --------------------------------------------------------------------------- #
# Host-side helpers
# --------------------------------------------------------------------------- #
def _round_up(x, m):
    return ((x + m - 1) // m) * m


def _choose_tile(rows, max_tile_e):
    """Pick the edge-tile size.

    * tiny batches: one grid step sized to the batch (no padding to a huge tile);
    * otherwise: >= 2 roughly-equal steps (multiple of 8 rows) so the
      "parallel" grid axis can shard across both TensorCores on v7x, with the
      tile capped at max_tile_e to amortize per-grid-step overhead.
    """
    r8 = _round_up(max(int(rows), 1), 8)
    if r8 <= 16:
        return r8
    n_steps = max(2, pl.cdiv(r8, max_tile_e))
    return _round_up(pl.cdiv(r8, n_steps), 8)


def _fold_bn(w, b, gamma, beta, mean, var):
    """Fold eval-mode BatchNorm1d into the preceding Linear (exact in f32)."""
    scale = gamma / jnp.sqrt(var + BN_EPS)        # [1, C]
    w_f = w * scale                               # [in, C] * [1, C]
    b_f = (b - mean) * scale + beta               # [1, C]
    return w_f, b_f


def _run_mlp_kernel(x_all, w1, b1, w2, b2, w3, b3, *, tile_e):
    """x_all: [padded_rows, 2H] -> [padded_rows, 2] (f32 scores, both heads)."""
    padded_rows, f_in = x_all.shape
    h1 = w1.shape[1]
    h2 = w2.shape[1]
    n_out = w3.shape[1]
    grid = padded_rows // tile_e

    # Grid-invariant operands: constant block index -> stay VMEM-resident.
    const = lambda arr: pl.BlockSpec(arr.shape, lambda i: (0, 0))

    # VMEM budget: double-buffered x/out tiles + weights + f32/bf16
    # intermediates + internal-scratch headroom; clamped to [32 MiB, 64 MiB]
    # so it is safe on every generation (v7x has 64 MiB physical per TC).
    itemsize = x_all.dtype.itemsize
    w_bytes = sum(a.size * a.dtype.itemsize for a in (w1, b1, w2, b2, w3, b3))
    budget = (2 * tile_e * f_in * itemsize          # x tile, double-buffered
              + 2 * tile_e * n_out * 4              # out tile, double-buffered
              + 2 * w_bytes                         # resident weights/biases
              + tile_e * (h1 + h2) * (4 + itemsize)  # f32 activations + casts
              + (8 << 20))                          # compiler scratch headroom
    vmem_limit = int(min(max(budget, 32 << 20), 64 << 20))

    flops = 2 * padded_rows * (f_in * h1 + h1 * h2 + h2 * n_out)
    bytes_accessed = int(x_all.size * itemsize + w_bytes + padded_rows * n_out * 4)

    return pl.pallas_call(
        _mlp_kernel,
        out_shape=jax.ShapeDtypeStruct((padded_rows, n_out), jnp.float32),
        grid_spec=pltpu.PrefetchScalarGridSpec(
            num_scalar_prefetch=0,
            grid=(grid,),
            in_specs=[
                pl.BlockSpec((tile_e, f_in), lambda i: (i, 0)),   # x tile
                const(w1), const(b1),
                const(w2), const(b2),
                const(w3), const(b3),
            ],
            out_specs=pl.BlockSpec((tile_e, n_out), lambda i: (i, 0)),
        ),
        compiler_params=pltpu.CompilerParams(
            dimension_semantics=("parallel",),
            vmem_limit_bytes=vmem_limit),
        cost_estimate=pl.CostEstimate(
            flops=flops, transcendentals=0, bytes_accessed=bytes_accessed),
    )(x_all, w1, b1, w2, b2, w3, b3)


# --------------------------------------------------------------------------- #
# Public forward (mirrors MLP.forward)
# --------------------------------------------------------------------------- #
def mlp_forward(z_dict, edge_index_a, edge_index_b, params, *,
                max_tile_e=1024, compute_dtype=jnp.bfloat16):
    """Returns (out_tra [E_a, 1], out_trb [E_b, 1])."""
    h_dim = z_dict["cdr3b"].shape[1]
    f_in = 2 * h_dim
    e_a = edge_index_a.shape[1]
    e_b = edge_index_b.shape[1]
    rows = e_a + e_b

    tile_e = _choose_tile(rows, max_tile_e)
    padded_rows = pl.cdiv(rows, tile_e) * tile_e

    # Fold eval-mode BN into Linear and fuse the two heads (host side, f32 exact).
    w1f, b1f = _fold_bn(params["w1"], params["b1"], params["g1"],
                        params["be1"], params["m1"], params["v1"])
    w2f, b2f = _fold_bn(params["w2"], params["b2"], params["g2"],
                        params["be2"], params["m2"], params["v2"])
    w3f = jnp.concatenate([params["w3_tra"], params["w3_trb"]], axis=1)   # [256, 2]
    b3f = jnp.concatenate([params["b3_tra"], params["b3_trb"]], axis=1)   # [1, 2]

    w1c = w1f.astype(compute_dtype)
    w2c = w2f.astype(compute_dtype)
    w3c = w3f.astype(compute_dtype)
    b1c = b1f.astype(jnp.float32)
    b2c = b2f.astype(jnp.float32)
    b3c = b3f.astype(jnp.float32)

    # Cast the (small) embedding tables ONCE, then gather each half directly
    # into the padded kernel operand: one write pass over [padded_rows, 2H],
    # no concat / pad / astype intermediates over the full edge set.
    cdr3b = z_dict["cdr3b"].astype(compute_dtype)
    tra_p = z_dict["tra_peptide"].astype(compute_dtype)
    trb_p = z_dict["trb_peptide"].astype(compute_dtype)

    x_all = jnp.zeros((padded_rows, f_in), compute_dtype)
    x_all = lax.dynamic_update_slice(x_all, cdr3b[edge_index_a[0]], (0, 0))
    x_all = lax.dynamic_update_slice(x_all, tra_p[edge_index_a[1]], (0, h_dim))
    x_all = lax.dynamic_update_slice(x_all, cdr3b[edge_index_b[0]], (e_a, 0))
    x_all = lax.dynamic_update_slice(x_all, trb_p[edge_index_b[1]], (e_a, h_dim))

    out = _run_mlp_kernel(x_all, w1c, b1c, w2c, b2c, w3c, b3c, tile_e=tile_e)

    out_tra = out[:e_a, 0:1]
    out_trb = out[e_a:rows, 1:2]
    return out_tra, out_trb


# --------------------------------------------------------------------------- #
# Pure-JAX f32 reference & synthetic params
# --------------------------------------------------------------------------- #
def mlp_forward_ref(z_dict, edge_index_a, edge_index_b, params):
    def path(x, head):
        h = x @ params["w1"] + params["b1"]
        h = (h - params["m1"]) / jnp.sqrt(params["v1"] + BN_EPS) * params["g1"] + params["be1"]
        h = jnp.maximum(h, 0.0)
        h = h @ params["w2"] + params["b2"]
        h = (h - params["m2"]) / jnp.sqrt(params["v2"] + BN_EPS) * params["g2"] + params["be2"]
        h = jnp.maximum(h, 0.0)
        return h @ params[f"w3_{head}"] + params[f"b3_{head}"]

    x_tra = jnp.concatenate(
        [z_dict["cdr3b"][edge_index_a[0]], z_dict["tra_peptide"][edge_index_a[1]]], axis=1)
    x_trb = jnp.concatenate(
        [z_dict["cdr3b"][edge_index_b[0]], z_dict["trb_peptide"][edge_index_b[1]]], axis=1)
    return path(x_tra, "tra"), path(x_trb, "trb")


def init_params(key, hidden_channels):
    """Deterministic synthetic parameters matching MLP.__init__ shapes."""
    f_in = hidden_channels * 2
    ks = jax.random.split(key, 12)
    p = {
        "w1": 0.05 * jax.random.normal(ks[0], (f_in, 512), jnp.float32),
        "b1": 0.01 * jax.random.normal(ks[1], (1, 512), jnp.float32),
        "g1": 1.0 + 0.1 * jax.random.normal(ks[2], (1, 512), jnp.float32),
        "be1": 0.1 * jax.random.normal(ks[3], (1, 512), jnp.float32),
        "m1": 0.05 * jax.random.normal(ks[4], (1, 512), jnp.float32),
        "v1": 1.0 + 0.1 * jnp.abs(jax.random.normal(ks[5], (1, 512), jnp.float32)),
        "w2": 0.05 * jax.random.normal(ks[6], (512, 256), jnp.float32),
        "b2": 0.01 * jax.random.normal(ks[7], (1, 256), jnp.float32),
        "g2": 1.0 + 0.1 * jax.random.normal(ks[8], (1, 256), jnp.float32),
        "be2": 0.1 * jax.random.normal(ks[9], (1, 256), jnp.float32),
        "m2": 0.05 * jax.random.normal(ks[10], (1, 256), jnp.float32),
        "v2": 1.0 + 0.1 * jnp.abs(jax.random.normal(ks[11], (1, 256), jnp.float32)),
    }
    k3 = jax.random.split(jax.random.fold_in(key, 99), 4)
    p["w3_tra"] = 0.05 * jax.random.normal(k3[0], (256, 1), jnp.float32)
    p["b3_tra"] = 0.01 * jax.random.normal(k3[1], (1, 1), jnp.float32)
    p["w3_trb"] = 0.05 * jax.random.normal(k3[2], (256, 1), jnp.float32)
    p["b3_trb"] = 0.01 * jax.random.normal(k3[3], (1, 1), jnp.float32)
    return p


if __name__ == "__main__":
    key = jax.random.PRNGKey(0)
    hidden_channels = 64           # small hidden size; lin dims 512/256/1 as in module
    n_cdr3b, n_tra, n_trb = 10, 6, 7
    E = 32                         # edges per relation

    k_z1, k_z2, k_z3, k_e1, k_e2, k_e3, k_e4, k_p = jax.random.split(key, 8)
    z_dict = {
        "cdr3b": jax.random.normal(k_z1, (n_cdr3b, hidden_channels), jnp.float32),
        "tra_peptide": jax.random.normal(k_z2, (n_tra, hidden_channels), jnp.float32),
        "trb_peptide": jax.random.normal(k_z3, (n_trb, hidden_channels), jnp.float32),
    }
    edge_index_a = jnp.stack([
        jax.random.randint(k_e1, (E,), 0, n_cdr3b),
        jax.random.randint(k_e2, (E,), 0, n_tra),
    ])
    edge_index_b = jnp.stack([
        jax.random.randint(k_e3, (E,), 0, n_cdr3b),
        jax.random.randint(k_e4, (E,), 0, n_trb),
    ])

    params = init_params(k_p, hidden_channels)

    ref_tra, ref_trb = mlp_forward_ref(z_dict, edge_index_a, edge_index_b, params)

    # TODO(synk): Dropout is identity in inference mode; training-mode dropout /
    # batch-statistics BN are not implemented.

    # f32 MXU operands: tight check against the pure-JAX reference
    # (correctness harness only; f32 goes through multi-pass MXU emulation).
    out_tra32, out_trb32 = mlp_forward(z_dict, edge_index_a, edge_index_b, params,
                                       compute_dtype=jnp.float32)
    jax.block_until_ready((out_tra32, out_trb32))
    assert out_tra32.shape == (E, 1) and out_trb32.shape == (E, 1)
    assert jnp.allclose(out_tra32, ref_tra, rtol=1e-4, atol=1e-4)
    assert jnp.allclose(out_trb32, ref_trb, rtol=1e-4, atol=1e-4)

    # bf16 MXU operands (default fast path): f32 accumulation, looser tolerance.
    out_tra, out_trb = mlp_forward(z_dict, edge_index_a, edge_index_b, params)
    jax.block_until_ready((out_tra, out_trb))
    assert out_tra.shape == (E, 1) and out_trb.shape == (E, 1)
    assert jnp.allclose(out_tra, ref_tra, rtol=5e-2, atol=3e-2)
    assert jnp.allclose(out_trb, ref_trb, rtol=5e-2, atol=3e-2)

    print("KERNEL_OK")
</pallas_src>

<mosaic_0001>
module attributes {stable_mosaic.version = 11 : i64} {
  func.func @_mlp_kernel(%arg0: i32, %arg1: memref<32x128xf32, #tpu.memory_space<vmem>>, %arg2: memref<128x512xf32, #tpu.memory_space<vmem>>, %arg3: memref<1x512xf32, #tpu.memory_space<vmem>>, %arg4: memref<512x256xf32, #tpu.memory_space<vmem>>, %arg5: memref<1x256xf32, #tpu.memory_space<vmem>>, %arg6: memref<256x2xf32, #tpu.memory_space<vmem>>, %arg7: memref<1x2xf32, #tpu.memory_space<vmem>>, %arg8: memref<32x2xf32, #tpu.memory_space<vmem>>) attributes {dimension_semantics = [#tpu.dimension_semantics<parallel>], iteration_bounds = array<i64: 2>, scalar_prefetch = 0 : i64, scratch_operands = 0 : i64, tpu.core_type = #tpu.core_type<tc>, window_params = [{transform_indices = @transform_0, window_bounds = array<i64: 32, 128>}, {pipeline_mode = #tpu.pipeline_mode<synchronous>, transform_indices = @transform_1, window_bounds = array<i64: 128, 512>}, {pipeline_mode = #tpu.pipeline_mode<synchronous>, transform_indices = @transform_2, window_bounds = array<i64: 1, 512>}, {pipeline_mode = #tpu.pipeline_mode<synchronous>, transform_indices = @transform_3, window_bounds = array<i64: 512, 256>}, {pipeline_mode = #tpu.pipeline_mode<synchronous>, transform_indices = @transform_4, window_bounds = array<i64: 1, 256>}, {pipeline_mode = #tpu.pipeline_mode<synchronous>, transform_indices = @transform_5, window_bounds = array<i64: 256, 2>}, {pipeline_mode = #tpu.pipeline_mode<synchronous>, transform_indices = @transform_6, window_bounds = array<i64: 1, 2>}, {transform_indices = @transform_7, window_bounds = array<i64: 32, 2>}]} {
    %c0 = arith.constant 0 : index
    %c0_0 = arith.constant 0 : index
    %0 = vector.load %arg1[%c0, %c0_0] : memref<32x128xf32, #tpu.memory_space<vmem>>, vector<32x128xf32>
    %c0_1 = arith.constant 0 : index
    %c0_2 = arith.constant 0 : index
    %1 = vector.load %arg2[%c0_1, %c0_2] : memref<128x512xf32, #tpu.memory_space<vmem>>, vector<128x512xf32>
    %cst = arith.constant dense<0.000000e+00> : vector<32x512xf32>
    %2 = tpu.matmul %0, %1, %cst {dimension_numbers = #tpu.dot_dimension_numbers<[1], [0], [0], [1], [0, 0, 1, 1], [], []>} : vector<32x128xf32>, vector<128x512xf32>, vector<32x512xf32> -> vector<32x512xf32>
    %c0_3 = arith.constant 0 : index
    %c0_4 = arith.constant 0 : index
    %3 = vector.load %arg3[%c0_3, %c0_4] : memref<1x512xf32, #tpu.memory_space<vmem>>, vector<1x512xf32>
    %4 = vector.broadcast %3 : vector<1x512xf32> to vector<32x512xf32>
    %5 = arith.addf %2, %4 : vector<32x512xf32>
    %cst_5 = arith.constant 0.000000e+00 : f32
    %6 = vector.broadcast %cst_5 : f32 to vector<32x512xf32>
    %7 = arith.maximumf %5, %6 : vector<32x512xf32>
    %c0_6 = arith.constant 0 : index
    %c0_7 = arith.constant 0 : index
    %8 = vector.load %arg4[%c0_6, %c0_7] : memref<512x256xf32, #tpu.memory_space<vmem>>, vector<512x256xf32>
    %cst_8 = arith.constant dense<0.000000e+00> : vector<32x256xf32>
    %9 = tpu.matmul %7, %8, %cst_8 {dimension_numbers = #tpu.dot_dimension_numbers<[1], [0], [0], [1], [0, 0, 1, 1], [], []>} : vector<32x512xf32>, vector<512x256xf32>, vector<32x256xf32> -> vector<32x256xf32>
    %c0_9 = arith.constant 0 : index
    %c0_10 = arith.constant 0 : index
    %10 = vector.load %arg5[%c0_9, %c0_10] : memref<1x256xf32, #tpu.memory_space<vmem>>, vector<1x256xf32>
    %11 = vector.broadcast %10 : vector<1x256xf32> to vector<32x256xf32>
    %12 = arith.addf %9, %11 : vector<32x256xf32>
    %cst_11 = arith.constant 0.000000e+00 : f32
    %13 = vector.broadcast %cst_11 : f32 to vector<32x256xf32>
    %14 = arith.maximumf %12, %13 : vector<32x256xf32>
    %c0_12 = arith.constant 0 : index
    %c0_13 = arith.constant 0 : index
    %15 = vector.load %arg6[%c0_12, %c0_13] : memref<256x2xf32, #tpu.memory_space<vmem>>, vector<256x2xf32>
    %cst_14 = arith.constant dense<0.000000e+00> : vector<32x2xf32>
    %16 = tpu.matmul %14, %15, %cst_14 {dimension_numbers = #tpu.dot_dimension_numbers<[1], [0], [0], [1], [0, 0, 1, 1], [], []>} : vector<32x256xf32>, vector<256x2xf32>, vector<32x2xf32> -> vector<32x2xf32>
    %c0_15 = arith.constant 0 : index
    %c0_16 = arith.constant 0 : index
    %17 = vector.load %arg7[%c0_15, %c0_16] : memref<1x2xf32, #tpu.memory_space<vmem>>, vector<1x2xf32>
    %18 = vector.broadcast %17 : vector<1x2xf32> to vector<32x2xf32>
    %19 = arith.addf %16, %18 : vector<32x2xf32>
    %c0_17 = arith.constant 0 : index
    %c0_18 = arith.constant 0 : index
    %20 = vector.load %arg8[%c0_17, %c0_18] : memref<32x2xf32, #tpu.memory_space<vmem>>, vector<32x2xf32>
    tpu.vector_store %arg8[%c0_17, %c0_18], %19 {strides = array<i32>} : memref<32x2xf32, #tpu.memory_space<vmem>>, vector<32x2xf32>,
    return
  }
  func.func @transform_0(%arg0: i32) -> (i32, i32) {
    %c0_i32 = arith.constant 0 : i32
    %c0_i32_0 = arith.constant 0 : i32
    return %arg0, %c0_i32 : i32, i32
  }
  func.func @transform_1(%arg0: i32) -> (i32, i32) {
    %c0_i32 = arith.constant 0 : i32
    %c0_i32_0 = arith.constant 0 : i32
    %c0_i32_1 = arith.constant 0 : i32
    return %c0_i32, %c0_i32_0 : i32, i32
  }
  func.func @transform_2(%arg0: i32) -> (i32, i32) {
    %c0_i32 = arith.constant 0 : i32
    %c0_i32_0 = arith.constant 0 : i32
    %c0_i32_1 = arith.constant 0 : i32
    return %c0_i32, %c0_i32_0 : i32, i32
  }
  func.func @transform_3(%arg0: i32) -> (i32, i32) {
    %c0_i32 = arith.constant 0 : i32
    %c0_i32_0 = arith.constant 0 : i32
    %c0_i32_1 = arith.constant 0 : i32
    return %c0_i32, %c0_i32_0 : i32, i32
  }
  func.func @transform_4(%arg0: i32) -> (i32, i32) {
    %c0_i32 = arith.constant 0 : i32
    %c0_i32_0 = arith.constant 0 : i32
    %c0_i32_1 = arith.constant 0 : i32
    return %c0_i32, %c0_i32_0 : i32, i32
  }
  func.func @transform_5(%arg0: i32) -> (i32, i32) {
    %c0_i32 = arith.constant 0 : i32
    %c0_i32_0 = arith.constant 0 : i32
    %c0_i32_1 = arith.constant 0 : i32
    return %c0_i32, %c0_i32_0 : i32, i32
  }
  func.func @transform_6(%arg0: i32) -> (i32, i32) {
    %c0_i32 = arith.constant 0 : i32
    %c0_i32_0 = arith.constant 0 : i32
    %c0_i32_1 = arith.constant 0 : i32
    return %c0_i32, %c0_i32_0 : i32, i32
  }
  func.func @transform_7(%arg0: i32) -> (i32, i32) {
    %c0_i32 = arith.constant 0 : i32
    %c0_i32_0 = arith.constant 0 : i32
    return %arg0, %c0_i32 : i32, i32
  }
}

</mosaic_0001>

<bundles_post_ra>
// kernel: tpu_custom_call.1
= control target key start
LH: loop header
LB: loop body
LE: loop exit
PB: predicated region body
PF: predicated region fallthrough
CT: control target
= control target key end

     0   :  { %12 = vsyncpa [#allocation3], 0  ;;  %s1597_s0 = inlined_call_operand.vmem [shape: f32[64,128], index: 0, kind: input, shape index: {}]   ;;  %s1598_s1 = inlined_call_operand.hbm [shape: f32[128,512], index: 1, kind: input, shape index: {}]   ;;  %s1599_s2 = inlined_call_operand.vmem [shape: f32[1,512], index: 2, kind: input, shape index: {}]   ;;  %s1600_s3 = inlined_call_operand.hbm [shape: f32[512,256], index: 3, kind: input, shape index: {}]   ;;  %s1601_s4 = inlined_call_operand.vmem [shape: f32[1,256], index: 4, kind: input, shape index: {}]   ;;  %s1602_s5 = inlined_call_operand.vmem [shape: f32[256,2], index: 5, kind: input, shape index: {}]   ;;  %s1603_s6 = inlined_call_operand.vmem [shape: f32[1,2], index: 6, kind: input, shape index: {}]   ;;  %s1604_s7 = inlined_call_operand.vmem [shape: f32[64,2], index: 7, kind: output, shape index: {}]  }
   0x1   :  { %13 = vsyncpa [#allocation5], 0  ;;  %s1370_s24 = smov 0  }
   0x2 LB: > { %s1323_s25 = smov [#allocation2]   ;;  %s1129_s27 = sadd.s32 4294967295, %s1321_s24   ;;  %s1321_s24 = sphi %s1370_s24, %s19_s24  }
   0x3   : > { %s214_s26 = sshll.u32 %s1323_s25, 4  ;;  %p1131_p0 = scmp.ge.s32.totalorder %s1321_s24, 1  ;;  %s215_s26 = int_to_ptr.vmem [resolvable:$true] %s214_s26 }
   0x4   : > { %p202_p1 = scmp.lt.s32.totalorder %s1321_s24, 3  ;;  %p1384_p3 = scmp.eq.s32.totalorder %s1129_s27, 0 }
   0x5   : > { %s1324_s30 = smov [#allocation4]   ;;  %s1266_s10 = scalar_lea.vmem %s215_s26, 8192 }
   0x6   : > { %p1378_p2 = pnand %p1131_p0, %p202_p1  ;;  %s230_s8 = sshll.u32 %s1324_s30, 4  ;;  %s231_s8 = int_to_ptr.vmem [resolvable:$true] %s230_s8 }
   0x7   : > { %p1267_p7 = scmp.ne.s32.totalorder %s215_s26, %s1266_s10  ;;  %p1274_p10 = scmp.lt.s32.totalorder %s215_s26, %s215_s26 }
   0x8   : > { %p1229_p4 = pneg %p1378_p2  ;;  %p1275_p11 = scmp.lt.s32.totalorder %s1266_s10, %s1266_s10 }
   0xa   : > { %p1392_p5 = pnand %p1384_p3, %p1229_p4  ;;  %p1276_p12 = por %p1275_p11, %p1274_p10 }
   0xc   : > { %p1257_p6 = pneg %p1392_p5 }
   0xe   : > { %p1269_p8 = pnand %p1267_p7, %p1257_p6 }
  0x10   : > { %p1270_p9 = pneg %p1269_p8 }
  0x12   : > { %p1277_p13 = pnand %p1276_p12, %p1270_p9 }
  0x14   : > { %1280 = shalt.err (!%p1277_p13)
}
  0x15   : > { %s1325_s11 = smov 512   ;;  %s1326_s12 = smov 32  }
  0x16   : > { %1232 = dma.hbm_to_vmem [thread:$0]  (!%p1392_p5), %s1598_s1, 8192, %s215_s26, [#allocation3], %s1325_s11, %s1325_s11, %s1326_s12  }
  0x17   : > { %s1292_s15 = scalar_lea.vmem %s231_s8, 16384  ;;  %p1300_p7 = scmp.lt.s32.totalorder %s231_s8, %s231_s8 }
  0x18   : > { %p1293_p0 = scmp.ne.s32.totalorder %s231_s8, %s1292_s15  ;;  %p1301_p8 = scmp.lt.s32.totalorder %s1292_s15, %s1292_s15 }
  0x1a   : > { %p1295_p1 = pnand %p1293_p0, %p1257_p6  ;;  %p1302_p10 = por %p1301_p8, %p1300_p7 }
  0x1c   : > { %p1296_p4 = pneg %p1295_p1 }
  0x1e   : > { %p1303_p9 = pnand %p1302_p10, %p1296_p4 }
  0x20   : > { %1306 = shalt.err (!%p1303_p9)
}
  0x21   : > { %s1327_s16 = smov 256   ;;  %s1328_s17 = smov 16  }
  0x22   : > { %1235 = dma.hbm_to_vmem [thread:$0]  (!%p1392_p5), %s1600_s3, 16384, %s231_s8, [#allocation5], %s1327_s16, %s1327_s16, %s1328_s17  }
  0x23   : > { %264 = sbr.rel (%p1378_p2) target bundleno = 691 (0x2b3), region = 48 }
  0x28   : > { %1312 = dma.done.wait (%p1384_p3), [#allocation3], 8192  }
  0x29   : > { %1314 = vsyncadd (%p1384_p3), [#allocation3], 4294959104 }
  0x2a   : > { %1316 = dma.done.wait (%p1384_p3), [#allocation5], 16384  }
  0x2b   : > { %1318 = vsyncadd (%p1384_p3), [#allocation5], 4294950912  ;;  %v1329_v0 = vmov 0.0   ;;  %v377_v1 = vld [vmem:[#allocation2 + $0x1e8] sm:$0xff]  ;;  %v379_v2 = vld [vmem:[#allocation2 + $0x1f8] sm:$0xff]  ;;  %s1428_s20 = sshll.u32 %s1129_s27, 2 }
  0x2c   : > { %466 = vmatprep.mubr.f32.mxu0 %v1329_v0  ;;  %555 = vmatprep.mubr.f32.mxu1 %v1329_v0  ;;  %v376_v3 = vld [vmem:[#allocation2 + $0x1e0] sm:$0xff]  ;;  %v378_v4 = vld [vmem:[#allocation2 + $0x1f0] sm:$0xff]  ;;  %v373_v5 = vld [vmem:[#allocation2 + $0x1c8] sm:$0xff]  ;;  %p301_p2 = scmp.lt.s32.totalorder %s1428_s20, 7  ;;  %vm1046_vm0 = vcmask 15360  }
  0x2d   : > { %402 = vmatprep.subr.mxu0 %v377_v1  ;;  %491 = vmatprep.subr.mxu1 %v379_v2  ;;  %v375_v6 = vld [vmem:[#allocation2 + $0x1d8] sm:$0xff]  ;;  %v372_v7 = vld [vmem:[#allocation2 + $0x1c0] sm:$0xff]  ;;  %v374_v8 = vld [vmem:[#allocation2 + $0x1d0] sm:$0xff] }
  0x2e   : > { %403 = vmatpush1.msra.mxu0 %v376_v3  ;;  %492 = vmatpush1.msra.mxu1 %v378_v4  ;;  %v369_v9 = vld [vmem:[#allocation2 + $0x1a8] sm:$0xff]  ;;  %v371_v10 = vld [vmem:[#allocation2 + $0x1b8] sm:$0xff]  ;;  %v368_v11 = vld [vmem:[#allocation2 + $0x1a0] sm:$0xff]  ;;  %s1609_s20 = smov (!%p301_p2, %s1428_s20), 7 }
  0x2f   : > { %404 = vmatprep.subr.mxu0 %v373_v5  ;;  %493 = vmatprep.subr.mxu1 %v375_v6  ;;  %v370_v12 = vld [vmem:[#allocation2 + $0x1b0] sm:$0xff]  ;;  %v365_v13 = vld [vmem:[#allocation2 + $0x188] sm:$0xff]  ;;  %v367_v14 = vld [vmem:[#allocation2 + $0x198] sm:$0xff]  ;;  %s1139_s21 = sshll.u32 %s1609_s20, 3 }
  0x30   : > { %405 = vmatpush1.msra.mxu0 %v372_v7  ;;  %494 = vmatpush1.msra.mxu1 %v374_v8  ;;  %v364_v15 = vld [vmem:[#allocation2 + $0x180] sm:$0xff]  ;;  %v366_v16 = vld [vmem:[#allocation2 + $0x190] sm:$0xff]  ;;  %v361_v17 = vld [vmem:[#allocation2 + $0x168] sm:$0xff]  ;;  %s1442_s25 = scalar_lea.vmem %s1597_s0, %s1139_s21  ;;  %s310_s15 = scalar_lea.vmem %s1604_s7, %s1139_s21 }
  0x31   : > { %406 = vmatprep.subr.mxu0 %v369_v9  ;;  %495 = vmatprep.subr.mxu1 %v371_v10  ;;  %v363_v18 = vld [vmem:[#allocation2 + $0x178] sm:$0xff]  ;;  %v360_v19 = vld [vmem:[#allocation2 + $0x160] sm:$0xff]  ;;  %v362_v20 = vld [vmem:[#allocation2 + $0x170] sm:$0xff] }
  0x32   : > { %407 = vmatpush1.msra.mxu0 %v368_v11  ;;  %496 = vmatpush1.msra.mxu1 %v370_v12  ;;  %v357_v21 = vld [vmem:[#allocation2 + $0x148] sm:$0xff]  ;;  %v359_v22 = vld [vmem:[#allocation2 + $0x158] sm:$0xff]  ;;  %v356_v23 = vld [vmem:[#allocation2 + $0x140] sm:$0xff] }
  0x33   : > { %408 = vmatprep.subr.mxu0 %v365_v13  ;;  %497 = vmatprep.subr.mxu1 %v367_v14  ;;  %v358_v24 = vld [vmem:[#allocation2 + $0x150] sm:$0xff]  ;;  %v353_v25 = vld [vmem:[#allocation2 + $0x128] sm:$0xff]  ;;  %v355_v26 = vld [vmem:[#allocation2 + $0x138] sm:$0xff] }
  0x34   : > { %409 = vmatpush1.msra.mxu0 %v364_v15  ;;  %498 = vmatpush1.msra.mxu1 %v366_v16  ;;  %v352_v27 = vld [vmem:[#allocation2 + $0x120] sm:$0xff]  ;;  %v354_v28 = vld [vmem:[#allocation2 + $0x130] sm:$0xff]  ;;  %v349_v29 = vld [vmem:[#allocation2 + $0x108] sm:$0xff] }
  0x35   : > { %410 = vmatprep.subr.mxu0 %v361_v17  ;;  %499 = vmatprep.subr.mxu1 %v363_v18  ;;  %v351_v30 = vld [vmem:[#allocation2 + $0x118] sm:$0xff]  ;;  %v348_v31 = vld [vmem:[#allocation2 + $0x100] sm:$0xff]  ;;  %v350_v32 = vld [vmem:[#allocation2 + $0x110] sm:$0xff] }
  0x36   : > { %411 = vmatpush1.msra.mxu0 %v360_v19  ;;  %500 = vmatpush1.msra.mxu1 %v362_v20  ;;  %v345_v33 = vld [vmem:[#allocation2 + $0xe8] sm:$0xff]  ;;  %v347_v34 = vld [vmem:[#allocation2 + $0xf8] sm:$0xff]  ;;  %v344_v35 = vld [vmem:[#allocation2 + $0xe0] sm:$0xff] }
  0x37   : > { %412 = vmatprep.subr.mxu0 %v357_v21  ;;  %501 = vmatprep.subr.mxu1 %v359_v22  ;;  %v346_v36 = vld [vmem:[#allocation2 + $0xf0] sm:$0xff]  ;;  %v341_v37 = vld [vmem:[#allocation2 + $0xc8] sm:$0xff]  ;;  %v343_v38 = vld [vmem:[#allocation2 + $0xd8] sm:$0xff] }
  0x38   : > { %413 = vmatpush1.msra.mxu0 %v356_v23  ;;  %502 = vmatpush1.msra.mxu1 %v358_v24  ;;  %v340_v39 = vld [vmem:[#allocation2 + $0xc0] sm:$0xff]  ;;  %v342_v40 = vld [vmem:[#allocation2 + $0xd0] sm:$0xff]  ;;  %v337_v41 = vld [vmem:[#allocation2 + $0xa8] sm:$0xff] }
  0x39   : > { %414 = vmatprep.subr.mxu0 %v353_v25  ;;  %503 = vmatprep.subr.mxu1 %v355_v26  ;;  %v339_v42 = vld [vmem:[#allocation2 + $0xb8] sm:$0xff]  ;;  %v336_v43 = vld [vmem:[#allocation2 + $0xa0] sm:$0xff]  ;;  %v338_v44 = vld [vmem:[#allocation2 + $0xb0] sm:$0xff] }
  0x3a   : > { %415 = vmatpush1.msra.mxu0 %v352_v27  ;;  %504 = vmatpush1.msra.mxu1 %v354_v28  ;;  %v333_v45 = vld [vmem:[#allocation2 + $0x88] sm:$0xff]  ;;  %v335_v46 = vld [vmem:[#allocation2 + $0x98] sm:$0xff]  ;;  %v332_v47 = vld [vmem:[#allocation2 + $0x80] sm:$0xff] }
  0x3b   : > { %416 = vmatprep.subr.mxu0 %v349_v29  ;;  %505 = vmatprep.subr.mxu1 %v351_v30  ;;  %v334_v48 = vld [vmem:[#allocation2 + $0x90] sm:$0xff]  ;;  %v329_v49 = vld [vmem:[#allocation2 + $0x68] sm:$0xff]  ;;  %v331_v50 = vld [vmem:[#allocation2 + $0x78] sm:$0xff] }
  0x3c   : > { %417 = vmatpush1.msra.mxu0 %v348_v31  ;;  %506 = vmatpush1.msra.mxu1 %v350_v32  ;;  %v328_v51 = vld [vmem:[#allocation2 + $0x60] sm:$0xff]  ;;  %v330_v52 = vld [vmem:[#allocation2 + $0x70] sm:$0xff]  ;;  %v325_v53 = vld [vmem:[#allocation2 + $0x48] sm:$0xff] }
  0x3d   : > { %418 = vmatprep.subr.mxu0 %v345_v33  ;;  %507 = vmatprep.subr.mxu1 %v347_v34  ;;  %v327_v54 = vld [vmem:[#allocation2 + $0x58] sm:$0xff]  ;;  %v324_v55 = vld [vmem:[#allocation2 + $0x40] sm:$0xff]  ;;  %v326_v56 = vld [vmem:[#allocation2 + $0x50] sm:$0xff] }
  0x3e   : > { %419 = vmatpush1.msra.mxu0 %v344_v35  ;;  %508 = vmatpush1.msra.mxu1 %v346_v36  ;;  %v321_v57 = vld [vmem:[#allocation2 + $0x28] sm:$0xff]  ;;  %v323_v58 = vld [vmem:[#allocation2 + $0x38] sm:$0xff]  ;;  %v320_v59 = vld [vmem:[#allocation2 + $0x20] sm:$0xff] }
  0x3f   : > { %420 = vmatprep.subr.mxu0 %v341_v37  ;;  %509 = vmatprep.subr.mxu1 %v343_v38  ;;  %v322_v60 = vld [vmem:[#allocation2 + $0x30] sm:$0xff]  ;;  %v317_v61 = vld [vmem:[#allocation2 + $0x8] sm:$0xff]  ;;  %v319_v62 = vld [vmem:[#allocation2 + $0x18] sm:$0xff] }
  0x40   : > { %421 = vmatpush1.msra.mxu0 %v340_v39  ;;  %510 = vmatpush1.msra.mxu1 %v342_v40  ;;  %v316_v63 = vld [vmem:[#allocation2] sm:$0xff]  ;;  %v318_v1 = vld [vmem:[#allocation2 + $0x10] sm:$0xff]  ;;  %v627_v3 = vld [vmem:[#allocation4 + $0xf8] sm:$0xff] }
  0x41   : > { %422 = vmatprep.subr.mxu0 %v337_v41  ;;  %511 = vmatprep.subr.mxu1 %v339_v42  ;;  %v312_v2 = vld [vmem:[%s1442_s25] sm:$0xff]  ;;  %v691_v4 = vld [vmem:[#allocation4 + $0x2f8] sm:$0xff]  ;;  %v626_v5 = vld [vmem:[#allocation4 + $0xf0] sm:$0xff] }
  0x42   : > { %423 = vmatpush1.msra.mxu0 %v336_v43  ;;  %512 = vmatpush1.msra.mxu1 %v338_v44  ;;  %v690_v6 = vld [vmem:[#allocation4 + $0x2f0] sm:$0xff]  ;;  %v313_v7 = vld [vmem:[%s1442_s25 + $0x8] sm:$0xff]  ;;  %v624_v10 = vld [vmem:[#allocation4 + $0xe0] sm:$0xff] }
  0x43   : > { %424 = vmatprep.subr.mxu0 %v333_v45  ;;  %513 = vmatprep.subr.mxu1 %v335_v46  ;;  %v625_v8 = vld [vmem:[#allocation4 + $0xe8] sm:$0xff]  ;;  %v688_v11 = vld [vmem:[#allocation4 + $0x2e0] sm:$0xff]  ;;  %v314_v12 = vld [vmem:[%s1442_s25 + $0x10] sm:$0xff] }
  0x44   : > { %425 = vmatpush1.msra.mxu0 %v332_v47  ;;  %514 = vmatpush1.msra.mxu1 %v334_v48  ;;  %v689_v9 = vld [vmem:[#allocation4 + $0x2e8] sm:$0xff]  ;;  %v623_v13 = vld [vmem:[#allocation4 + $0xd8] sm:$0xff]  ;;  %v622_v15 = vld [vmem:[#allocation4 + $0xd0] sm:$0xff] }
  0x45   : > { %426 = vmatprep.subr.mxu0 %v329_v49  ;;  %515 = vmatprep.subr.mxu1 %v331_v50  ;;  %v687_v14 = vld [vmem:[#allocation4 + $0x2d8] sm:$0xff]  ;;  %v686_v16 = vld [vmem:[#allocation4 + $0x2d0] sm:$0xff]  ;;  %v621_v18 = vld [vmem:[#allocation4 + $0xc8] sm:$0xff] }
  0x46   : > { %427 = vmatpush1.msra.mxu0 %v328_v51  ;;  %516 = vmatpush1.msra.mxu1 %v330_v52  ;;  %v315_v17 = vld [vmem:[%s1442_s25 + $0x18] sm:$0xff]  ;;  %v685_v19 = vld [vmem:[#allocation4 + $0x2c8] sm:$0xff]  ;;  %v620_v20 = vld [vmem:[#allocation4 + $0xc0] sm:$0xff] }
  0x47   : > { %428 = vmatprep.subr.mxu0 %v325_v53  ;;  %517 = vmatprep.subr.mxu1 %v327_v54  ;;  %v684_v21 = vld [vmem:[#allocation4 + $0x2c0] sm:$0xff]  ;;  %v619_v22 = vld [vmem:[#allocation4 + $0xb8] sm:$0xff]  ;;  %v618_v24 = vld [vmem:[#allocation4 + $0xb0] sm:$0xff] }
  0x48   : > { %429 = vmatpush1.msra.mxu0 %v324_v55  ;;  %518 = vmatpush1.msra.mxu1 %v326_v56  ;;  %v683_v23 = vld [vmem:[#allocation4 + $0x2b8] sm:$0xff]  ;;  %v682_v25 = vld [vmem:[#allocation4 + $0x2b0] sm:$0xff]  ;;  %v681_v26 = vld [vmem:[#allocation4 + $0x2a8] sm:$0xff] }
  0x49   : > { %430 = vmatprep.subr.mxu0 %v321_v57  ;;  %519 = vmatprep.subr.mxu1 %v323_v58  ;;  %v616_v27 = vld [vmem:[#allocation4 + $0xa0] sm:$0xff]  ;;  %v615_v29 = vld [vmem:[#allocation4 + $0x98] sm:$0xff]  ;;  %v614_v31 = vld [vmem:[#allocation4 + $0x90] sm:$0xff] }
  0x4a   : > { %431 = vmatpush1.msra.mxu0 %v320_v59  ;;  %520 = vmatpush1.msra.mxu1 %v322_v60  ;;  %v680_v28 = vld [vmem:[#allocation4 + $0x2a0] sm:$0xff]  ;;  %v679_v30 = vld [vmem:[#allocation4 + $0x298] sm:$0xff]  ;;  %v678_v32 = vld [vmem:[#allocation4 + $0x290] sm:$0xff] }
  0x4b   : > { %432 = vmatprep.subr.mxu0 %v317_v61  ;;  %521 = vmatprep.subr.mxu1 %v319_v62  ;;  %v613_v33 = vld [vmem:[#allocation4 + $0x88] sm:$0xff]  ;;  %v612_v35 = vld [vmem:[#allocation4 + $0x80] sm:$0xff]  ;;  %v611_v37 = vld [vmem:[#allocation4 + $0x78] sm:$0xff] }
  0x4c   : > { %433 = vmatpush1.msra.mxu0 %v316_v63  ;;  %522 = vmatpush1.msra.mxu1 %v318_v1  ;;  %v677_v34 = vld [vmem:[#allocation4 + $0x288] sm:$0xff]  ;;  %v676_v36 = vld [vmem:[#allocation4 + $0x280] sm:$0xff]  ;;  %v675_v38 = vld [vmem:[#allocation4 + $0x278] sm:$0xff] }
  0x4d   : > { %467 = vmatmul.mubr.f32.vlgmr.msra.gmra.mxu0 %v312_v2  ;;  %556 = vmatmul.mubr.f32.vlgmr.msra.gmra.mxu1 %v312_v2  ;;  %v610_v39 = vld [vmem:[#allocation4 + $0x70] sm:$0xff]  ;;  %v609_v41 = vld [vmem:[#allocation4 + $0x68] sm:$0xff]  ;;  %v608_v43 = vld [vmem:[#allocation4 + $0x60] sm:$0xff] }
  0x4e   : > { %472 = vmatprep.mubr.f32.mxu0 %v1329_v0  ;;  %561 = vmatprep.mubr.f32.mxu1 %v1329_v0  ;;  %v674_v40 = vld [vmem:[#allocation4 + $0x270] sm:$0xff]  ;;  %v673_v42 = vld [vmem:[#allocation4 + $0x268] sm:$0xff]  ;;  %v672_v44 = vld [vmem:[#allocation4 + $0x260] sm:$0xff] }
  0x4f   : > { %736 = vmatprep.subr.mxu0 %v627_v3  ;;  %825 = vmatprep.subr.mxu1 %v691_v4  ;;  %v607_v45 = vld [vmem:[#allocation4 + $0x58] sm:$0xff]  ;;  %v606_v47 = vld [vmem:[#allocation4 + $0x50] sm:$0xff]  ;;  %v605_v49 = vld [vmem:[#allocation4 + $0x48] sm:$0xff] }
  0x50   : > { %737 = vmatpush1.msra.mxu0 %v626_v5  ;;  %826 = vmatpush1.msra.mxu1 %v690_v6  ;;  %v671_v46 = vld [vmem:[#allocation4 + $0x258] sm:$0xff]  ;;  %v670_v48 = vld [vmem:[#allocation4 + $0x250] sm:$0xff]  ;;  %v669_v50 = vld [vmem:[#allocation4 + $0x248] sm:$0xff] }
  0x51   : > { %473 = vmatmul.mubr.f32.gmra.mxu0 %v313_v7  ;;  %562 = vmatmul.mubr.f32.gmra.mxu1 %v313_v7  ;;  %v604_v51 = vld [vmem:[#allocation4 + $0x40] sm:$0xff]  ;;  %v603_v53 = vld [vmem:[#allocation4 + $0x38] sm:$0xff]  ;;  %v602_v55 = vld [vmem:[#allocation4 + $0x30] sm:$0xff] }
  0x52   : > { %478 = vmatprep.mubr.f32.mxu0 %v1329_v0  ;;  %567 = vmatprep.mubr.f32.mxu1 %v1329_v0  ;;  %v668_v52 = vld [vmem:[#allocation4 + $0x240] sm:$0xff]  ;;  %v667_v54 = vld [vmem:[#allocation4 + $0x238] sm:$0xff]  ;;  %v666_v56 = vld [vmem:[#allocation4 + $0x230] sm:$0xff] }
  0x53   : > { %738 = vmatprep.subr.mxu0 %v625_v8  ;;  %827 = vmatprep.subr.mxu1 %v689_v9  ;;  %v601_v57 = vld [vmem:[#allocation4 + $0x28] sm:$0xff]  ;;  %v600_v59 = vld [vmem:[#allocation4 + $0x20] sm:$0xff]  ;;  %v599_v61 = vld [vmem:[#allocation4 + $0x18] sm:$0xff] }
  0x54   : > { %739 = vmatpush1.msra.mxu0 %v624_v10  ;;  %828 = vmatpush1.msra.mxu1 %v688_v11  ;;  %v665_v58 = vld [vmem:[#allocation4 + $0x228] sm:$0xff]  ;;  %v664_v60 = vld [vmem:[#allocation4 + $0x220] sm:$0xff]  ;;  %v663_v62 = vld [vmem:[#allocation4 + $0x218] sm:$0xff] }
  0x55   : > { %479 = vmatmul.mubr.f32.gmra.mxu0 %v314_v12  ;;  %568 = vmatmul.mubr.f32.gmra.mxu1 %v314_v12  ;;  %v598_v63 = vld [vmem:[#allocation4 + $0x10] sm:$0xff]  ;;  %v597_v2 = vld [vmem:[#allocation4 + $0x8] sm:$0xff]  ;;  %v596_v4 = vld [vmem:[#allocation4] sm:$0xff] }
  0x56   : > { %484 = vmatprep.mubr.f32.mxu0 %v1329_v0  ;;  %573 = vmatprep.mubr.f32.mxu1 %v1329_v0  ;;  %v617_v0 = vld [vmem:[#allocation4 + $0xa8] sm:$0xff]  ;;  %v662_v1 = vld [vmem:[#allocation4 + $0x210] sm:$0xff]  ;;  %v660_v5 = vld [vmem:[#allocation4 + $0x200] sm:$0xff] }
  0x57   : > { %740 = vmatprep.subr.mxu0 %v623_v13  ;;  %829 = vmatprep.subr.mxu1 %v687_v14  ;;  %v661_v3 = vld [vmem:[#allocation4 + $0x208] sm:$0xff]  ;;  %v659_v6 = vld [vmem:[#allocation4 + $0x1f8] sm:$0xff]  ;;  %v658_v8 = vld [vmem:[#allocation4 + $0x1f0] sm:$0xff] }
  0x58   : > { %741 = vmatpush1.msra.mxu0 %v622_v15  ;;  %830 = vmatpush1.msra.mxu1 %v686_v16  ;;  %v723_v7 = vld [vmem:[#allocation4 + $0x3f8] sm:$0xff]  ;;  %v722_v9 = vld [vmem:[#allocation4 + $0x3f0] sm:$0xff]  ;;  %v657_v10 = vld [vmem:[#allocation4 + $0x1e8] sm:$0xff] }
  0x59   : > { %485 = vmatmul.mubr.f32.gmra.mxu0 %v315_v17  ;;  %574 = vmatmul.mubr.f32.gmra.mxu1 %v315_v17  ;;  %v721_v11 = vld [vmem:[#allocation4 + $0x3e8] sm:$0xff]  ;;  %v656_v12 = vld [vmem:[#allocation4 + $0x1e0] sm:$0xff]  ;;  %v655_v14 = vld [vmem:[#allocation4 + $0x1d8] sm:$0xff] }
  0x5a   : > { %742 = vmatprep.subr.mxu0 %v621_v18  ;;  %831 = vmatprep.subr.mxu1 %v685_v19  ;;  %v720_v13 = vld [vmem:[#allocation4 + $0x3e0] sm:$0xff]  ;;  %v719_v15 = vld [vmem:[#allocation4 + $0x3d8] sm:$0xff]  ;;  %v654_v16 = vld [vmem:[#allocation4 + $0x1d0] sm:$0xff] }
  0x5b   : > { %743 = vmatpush1.msra.mxu0 %v620_v20  ;;  %832 = vmatpush1.msra.mxu1 %v684_v21  ;;  %v718_v17 = vld [vmem:[#allocation4 + $0x3d0] sm:$0xff]  ;;  %v653_v18 = vld [vmem:[#allocation4 + $0x1c8] sm:$0xff]  ;;  %v652_v20 = vld [vmem:[#allocation4 + $0x1c0] sm:$0xff] }
  0x5c   : > { %744 = vmatprep.subr.mxu0 %v619_v22  ;;  %833 = vmatprep.subr.mxu1 %v683_v23  ;;  %v717_v19 = vld [vmem:[#allocation4 + $0x3c8] sm:$0xff]  ;;  %v716_v21 = vld [vmem:[#allocation4 + $0x3c0] sm:$0xff]  ;;  %v651_v22 = vld [vmem:[#allocation4 + $0x1b8] sm:$0xff] }
  0x5d   : > { %745 = vmatpush1.msra.mxu0 %v618_v24  ;;  %834 = vmatpush1.msra.mxu1 %v682_v25  ;;  %v715_v23 = vld [vmem:[#allocation4 + $0x3b8] sm:$0xff]  ;;  %v650_v24 = vld [vmem:[#allocation4 + $0x1b0] sm:$0xff] }
  0x5e   : > { %746 = vmatprep.subr.mxu0 %v617_v0  ;;  %835 = vmatprep.subr.mxu1 %v681_v26  ;;  %v714_v25 = vld [vmem:[#allocation4 + $0x3b0] sm:$0xff]  ;;  %v649_v0 = vld [vmem:[#allocation4 + $0x1a8] sm:$0xff] }
  0x5f   : > { %747 = vmatpush1.msra.mxu0 %v616_v27  ;;  %836 = vmatpush1.msra.mxu1 %v680_v28  ;;  %v713_v26 = vld [vmem:[#allocation4 + $0x3a8] sm:$0xff]  ;;  %v648_v27 = vld [vmem:[#allocation4 + $0x1a0] sm:$0xff] }
  0x60   : > { %748 = vmatprep.subr.mxu0 %v615_v29  ;;  %837 = vmatprep.subr.mxu1 %v679_v30  ;;  %v712_v28 = vld [vmem:[#allocation4 + $0x3a0] sm:$0xff]  ;;  %v647_v29 = vld [vmem:[#allocation4 + $0x198] sm:$0xff] }
  0x61   : > { %749 = vmatpush1.msra.mxu0 %v614_v31  ;;  %838 = vmatpush1.msra.mxu1 %v678_v32  ;;  %v711_v30 = vld [vmem:[#allocation4 + $0x398] sm:$0xff]  ;;  %v646_v31 = vld [vmem:[#allocation4 + $0x190] sm:$0xff] }
  0x62   : > { %750 = vmatprep.subr.mxu0 %v613_v33  ;;  %839 = vmatprep.subr.mxu1 %v677_v34  ;;  %v710_v32 = vld [vmem:[#allocation4 + $0x390] sm:$0xff]  ;;  %v645_v33 = vld [vmem:[#allocation4 + $0x188] sm:$0xff] }
  0x63   : > { %751 = vmatpush1.msra.mxu0 %v612_v35  ;;  %840 = vmatpush1.msra.mxu1 %v676_v36  ;;  %v709_v34 = vld [vmem:[#allocation4 + $0x388] sm:$0xff]  ;;  %v644_v35 = vld [vmem:[#allocation4 + $0x180] sm:$0xff] }
  0x64   : > { %752 = vmatprep.subr.mxu0 %v611_v37  ;;  %841 = vmatprep.subr.mxu1 %v675_v38  ;;  %v708_v36 = vld [vmem:[#allocation4 + $0x380] sm:$0xff]  ;;  %v643_v37 = vld [vmem:[#allocation4 + $0x178] sm:$0xff] }
  0x65   : > { %753 = vmatpush1.msra.mxu0 %v610_v39  ;;  %842 = vmatpush1.msra.mxu1 %v674_v40  ;;  %v707_v38 = vld [vmem:[#allocation4 + $0x378] sm:$0xff]  ;;  %v642_v39 = vld [vmem:[#allocation4 + $0x170] sm:$0xff] }
  0x66   : > { %754 = vmatprep.subr.mxu0 %v609_v41  ;;  %843 = vmatprep.subr.mxu1 %v673_v42  ;;  %v706_v40 = vld [vmem:[#allocation4 + $0x370] sm:$0xff]  ;;  %v641_v41 = vld [vmem:[#allocation4 + $0x168] sm:$0xff] }
  0x67   : > { %755 = vmatpush1.msra.mxu0 %v608_v43  ;;  %844 = vmatpush1.msra.mxu1 %v672_v44  ;;  %v705_v42 = vld [vmem:[#allocation4 + $0x368] sm:$0xff]  ;;  %v640_v43 = vld [vmem:[#allocation4 + $0x160] sm:$0xff] }
  0x68   : > { %756 = vmatprep.subr.mxu0 %v607_v45  ;;  %845 = vmatprep.subr.mxu1 %v671_v46  ;;  %v704_v44 = vld [vmem:[#allocation4 + $0x360] sm:$0xff]  ;;  %v639_v45 = vld [vmem:[#allocation4 + $0x158] sm:$0xff] }
  0x69   : > { %757 = vmatpush1.msra.mxu0 %v606_v47  ;;  %846 = vmatpush1.msra.mxu1 %v670_v48  ;;  %v703_v46 = vld [vmem:[#allocation4 + $0x358] sm:$0xff]  ;;  %v638_v47 = vld [vmem:[#allocation4 + $0x150] sm:$0xff] }
  0x6a   : > { %758 = vmatprep.subr.mxu0 %v605_v49  ;;  %847 = vmatprep.subr.mxu1 %v669_v50  ;;  %v702_v48 = vld [vmem:[#allocation4 + $0x350] sm:$0xff]  ;;  %v637_v49 = vld [vmem:[#allocation4 + $0x148] sm:$0xff] }
  0x6b   : > { %759 = vmatpush1.msra.mxu0 %v604_v51  ;;  %848 = vmatpush1.msra.mxu1 %v668_v52  ;;  %v701_v50 = vld [vmem:[#allocation4 + $0x348] sm:$0xff]  ;;  %v636_v51 = vld [vmem:[#allocation4 + $0x140] sm:$0xff] }
  0x6c   : > { %760 = vmatprep.subr.mxu0 %v603_v53  ;;  %849 = vmatprep.subr.mxu1 %v667_v54  ;;  %v700_v52 = vld [vmem:[#allocation4 + $0x340] sm:$0xff]  ;;  %v635_v53 = vld [vmem:[#allocation4 + $0x138] sm:$0xff] }
  0x6d   : > { %761 = vmatpush1.msra.mxu0 %v602_v55  ;;  %850 = vmatpush1.msra.mxu1 %v666_v56  ;;  %v699_v54 = vld [vmem:[#allocation4 + $0x338] sm:$0xff]  ;;  %v634_v55 = vld [vmem:[#allocation4 + $0x130] sm:$0xff] }
  0x6e   : > { %762 = vmatprep.subr.mxu0 %v601_v57  ;;  %851 = vmatprep.subr.mxu1 %v665_v58  ;;  %v698_v56 = vld [vmem:[#allocation4 + $0x330] sm:$0xff]  ;;  %v633_v57 = vld [vmem:[#allocation4 + $0x128] sm:$0xff] }
  0x6f   : > { %763 = vmatpush1.msra.mxu0 %v600_v59  ;;  %852 = vmatpush1.msra.mxu1 %v664_v60  ;;  %v697_v58 = vld [vmem:[#allocation4 + $0x328] sm:$0xff]  ;;  %v632_v59 = vld [vmem:[#allocation4 + $0x120] sm:$0xff] }
  0x70   : > { %764 = vmatprep.subr.mxu0 %v599_v61  ;;  %853 = vmatprep.subr.mxu1 %v663_v62  ;;  %v696_v60 = vld [vmem:[#allocation4 + $0x320] sm:$0xff]  ;;  %v631_v61 = vld [vmem:[#allocation4 + $0x118] sm:$0xff] }
  0x71   : > { %765 = vmatpush1.msra.mxu0 %v598_v63  ;;  %854 = vmatpush1.msra.mxu1 %v662_v1  ;;  %v695_v62 = vld [vmem:[#allocation4 + $0x318] sm:$0xff]  ;;  %v630_v63 = vld [vmem:[#allocation4 + $0x110] sm:$0xff] }
  0x72   : > { %766 = vmatprep.subr.mxu0 %v597_v2  ;;  %855 = vmatprep.subr.mxu1 %v661_v3  ;;  %v694_v1 = vld [vmem:[#allocation4 + $0x310] sm:$0xff]  ;;  %v629_v2 = vld [vmem:[#allocation4 + $0x108] sm:$0xff] }
  0x73   : > { %767 = vmatpush1.msra.mxu0 %v596_v4  ;;  %856 = vmatpush1.msra.mxu1 %v660_v5  ;;  %v693_v3 = vld [vmem:[#allocation4 + $0x308] sm:$0xff]  ;;  %v628_v4 = vld [vmem:[#allocation4 + $0x100] sm:$0xff] }
  0x74   : > { %768 = vmatprep.subr.mxu0 %v659_v6  ;;  %857 = vmatprep.subr.mxu1 %v723_v7  ;;  %v692_v5 = vld [vmem:[#allocation4 + $0x300] sm:$0xff]  ;;  %v953_v6 = vld [vmem:[%s1602_s5 + $0xf8] sm:$0xff]  ;;  %v382_v7 = vlaneseq }
  0x75   : > { %769 = vmatpush2.msra.mxu0 %v658_v8  ;;  %858 = vmatpush2.msra.mxu1 %v722_v9 }
  0x76   : > { %770 = vmatprep.subr.mxu0 %v657_v10  ;;  %859 = vmatprep.subr.mxu1 %v721_v11  ;;  %v1457_v8 = vshrl.u32 %v382_v7, 7  ;;  %v380_v11 = vld [vmem:[%s1599_s2] sm:$0xf] }
  0x77   : > { %771 = vmatpush2.msra.mxu0 %v656_v12  ;;  %860 = vmatpush2.msra.mxu1 %v720_v13 }
  0x78   : > { %772 = vmatprep.subr.mxu0 %v655_v14  ;;  %861 = vmatprep.subr.mxu1 %v719_v15  ;;  %v392_v9 = vsub.s32 2, %v1457_v8  ;;  %v384_v10 = vsub.s32 0, %v1457_v8  ;;  %v388_v12 = vsub.s32 1, %v1457_v8  ;;  %v396_v13 = vsub.s32 3, %v1457_v8 }
  0x79   : > { %773 = vmatpush2.msra.mxu0 %v654_v16  ;;  %862 = vmatpush2.msra.mxu1 %v718_v17 }
  0x7a   : > { %774 = vmatprep.subr.mxu0 %v653_v18  ;;  %863 = vmatprep.subr.mxu1 %v717_v19  ;;  %v393_v14 = vrot.slane %v380_v11, %v392_v9  ;;  %v385_v15 = vrot.slane %v380_v11, %v384_v10  ;;  %v1470_v16 = vrot.slane %v380_v11, %v388_v12  ;;  %v934_v9 = vld [vmem:[%s1602_s5 + $0x60] sm:$0xff] }
  0x7b   : > { %775 = vmatpush2.msra.mxu0 %v652_v20  ;;  %864 = vmatpush2.msra.mxu1 %v716_v21  ;;  %v1472_v17 = vrot.slane %v380_v11, %v396_v13  ;;  %v949_v11 = vld [vmem:[%s1602_s5 + $0xd8] sm:$0xff] }
  0x7c   : > { %776 = vmatprep.subr.mxu0 %v651_v22  ;;  %865 = vmatprep.subr.mxu1 %v715_v23  ;;  %v933_v13 = vld [vmem:[%s1602_s5 + $0x58] sm:$0xff] }
  0x7d   : > { %777 = vmatpush2.msra.mxu0 %v650_v24  ;;  %866 = vmatpush2.msra.mxu1 %v714_v25 }
  0x7e   : > { %778 = vmatprep.subr.mxu0 %v649_v0  ;;  %867 = vmatprep.subr.mxu1 %v713_v26 }
  0x7f   : > { %779 = vmatpush2.msra.mxu0 %v648_v27  ;;  %868 = vmatpush2.msra.mxu1 %v712_v28 }
  0x80   : > { %780 = vmatprep.subr.mxu0 %v647_v29  ;;  %869 = vmatprep.subr.mxu1 %v711_v30 }
  0x81   : > { %781 = vmatpush2.msra.mxu0 %v646_v31  ;;  %870 = vmatpush2.msra.mxu1 %v710_v32 }
  0x82   : > { %782 = vmatprep.subr.mxu0 %v645_v33  ;;  %871 = vmatprep.subr.mxu1 %v709_v34 }
  0x83   : > { %783 = vmatpush2.msra.mxu0 %v644_v35  ;;  %872 = vmatpush2.msra.mxu1 %v708_v36  ;;  %v937_v35 = vld [vmem:[%s1602_s5 + $0x78] sm:$0xff] }
  0x84   : > { %784 = vmatprep.subr.mxu0 %v643_v37  ;;  %873 = vmatprep.subr.mxu1 %v707_v38  ;;  %v952_v38 = vld [vmem:[%s1602_s5 + $0xf0] sm:$0xff] }
  0x85   : > { %785 = vmatpush2.msra.mxu0 %v642_v39  ;;  %874 = vmatpush2.msra.mxu1 %v706_v40 }
  0x86   : > { %786 = vmatprep.subr.mxu0 %v641_v41  ;;  %875 = vmatprep.subr.mxu1 %v705_v42 }
  0x87   : > { %787 = vmatpush2.msra.mxu0 %v640_v43  ;;  %876 = vmatpush2.msra.mxu1 %v704_v44 }
  0x88   : > { %788 = vmatprep.subr.mxu0 %v639_v45  ;;  %877 = vmatprep.subr.mxu1 %v703_v46 }
  0x89   : > { %789 = vmatpush2.msra.mxu0 %v638_v47  ;;  %878 = vmatpush2.msra.mxu1 %v702_v48 }
  0x8a   : > { %790 = vmatprep.subr.mxu0 %v637_v49  ;;  %879 = vmatprep.subr.mxu1 %v701_v50  ;;  %v936_v49 = vld [vmem:[%s1602_s5 + $0x70] sm:$0xff] }
  0x8b   : > { %791 = vmatpush2.msra.mxu0 %v636_v51  ;;  %880 = vmatpush2.msra.mxu1 %v700_v52  ;;  %v951_v52 = vld [vmem:[%s1602_s5 + $0xe8] sm:$0xff] }
  0x8c   : > { %792 = vmatprep.subr.mxu0 %v635_v53  ;;  %881 = vmatprep.subr.mxu1 %v699_v54 }
  0x8d   : > { %793 = vmatpush2.msra.mxu0 %v634_v55  ;;  %882 = vmatpush2.msra.mxu1 %v698_v56 }
  0x8e   : > { %794 = vmatprep.subr.mxu0 %v633_v57  ;;  %883 = vmatprep.subr.mxu1 %v697_v58 }
  0x8f   : > { %795 = vmatpush2.msra.mxu0 %v632_v59  ;;  %884 = vmatpush2.msra.mxu1 %v696_v60 }
  0x90   : > { %796 = vmatprep.subr.mxu0 %v631_v61  ;;  %885 = vmatprep.subr.mxu1 %v695_v62 }
  0x91   : > { %797 = vmatpush2.msra.mxu0 %v630_v63  ;;  %886 = vmatpush2.msra.mxu1 %v694_v1  ;;  %v935_v63 = vld [vmem:[%s1602_s5 + $0x68] sm:$0xff] }
  0x92   : > { %798 = vmatprep.subr.mxu0 %v629_v2  ;;  %887 = vmatprep.subr.mxu1 %v693_v3  ;;  %v950_v3 = vld [vmem:[%s1602_s5 + $0xe0] sm:$0xff] }
  0x93   : > { %799 = vmatpush2.msra.mxu0 %v628_v4  ;;  %888 = vmatpush2.msra.mxu1 %v692_v5 }
  0x94   : > { %1145 = vmatprep.subr.mxu0 %v953_v6  ;;  %1189 = vmatprep.subr.mxu1 %v953_v6 }
 0x10d   : > { %v468_v18 = vpop.f32.mrf.mxu0  ;;  %v557_v19 = vpop.f32.mrf.mxu1 }
 0x10e   : > { %v558_v20 = vadd.f32 %v557_v19, %v393_v14  ;;  %v469_v21 = vadd.f32 %v468_v18, %v385_v15  ;;  %v946_v18 = vld [vmem:[%s1602_s5 + $0xc0] sm:$0xff] }
 0x10f   : > { %v470_v22 = vpop.f32.mrf.mxu0  ;;  %v559_v23 = vpop.f32.mrf.mxu1  ;;  %v930_v19 = vld [vmem:[%s1602_s5 + $0x40] sm:$0xff] }
 0x110   : > { %v471_v24 = vadd.f32 %v470_v22, %v1470_v16  ;;  %v560_v25 = vadd.f32 %v559_v23, %v1472_v17  ;;  %v582_v0 = vmax.f32 %v558_v20, 0.0  ;;  %v580_v31 = vmax.f32 %v469_v21, 0.0  ;;  %v945_v20 = vld [vmem:[%s1602_s5 + $0xb8] sm:$0xff]  ;;  %v944_v22 = vld [vmem:[%s1602_s5 + $0xb0] sm:$0xff] }
 0x111   : > { %v474_v26 = vpop.f32.mrf.mxu0  ;;  %v563_v27 = vpop.f32.mrf.mxu1  ;;  %v929_v21 = vld [vmem:[%s1602_s5 + $0x38] sm:$0xff]  ;;  %v928_v23 = vld [vmem:[%s1602_s5 + $0x30] sm:$0xff] }
 0x112   : > { %v581_v28 = vmax.f32 %v471_v24, 0.0  ;;  %v583_v29 = vmax.f32 %v560_v25, 0.0  ;;  %v564_v30 = vadd.f32 %v563_v27, %v393_v14  ;;  %v475_v32 = vadd.f32 %v474_v26, %v385_v15  ;;  %v943_v24 = vld [vmem:[%s1602_s5 + $0xa8] sm:$0xff]  ;;  %v926_v26 = vld [vmem:[%s1602_s5 + $0x20] sm:$0xff]  ;;  %v941_v27 = vld [vmem:[%s1602_s5 + $0x98] sm:$0xff] }
 0x113   : > { %v476_v33 = vpop.f32.mrf.mxu0  ;;  %v565_v34 = vpop.f32.mrf.mxu1  ;;  %v927_v25 = vld [vmem:[%s1602_s5 + $0x28] sm:$0xff] }
 0x114   : > { %v477_v36 = vadd.f32 %v476_v33, %v1470_v16  ;;  %v566_v37 = vadd.f32 %v565_v34, %v1472_v17  ;;  %800 = vmatprep.mubr.f32.mxu0 %v581_v28  ;;  %889 = vmatprep.mubr.f32.mxu1 %v583_v29  ;;  %v586_v39 = vmax.f32 %v564_v30, 0.0  ;;  %v584_v45 = vmax.f32 %v475_v32, 0.0  ;;  %v925_v28 = vld [vmem:[%s1602_s5 + $0x18] sm:$0xff]  ;;  %v940_v29 = vld [vmem:[%s1602_s5 + $0x90] sm:$0xff]  ;;  %v923_v32 = vld [vmem:[%s1602_s5 + $0x8] sm:$0xff] }
 0x115   : > { %v480_v40 = vpop.f32.mrf.mxu0  ;;  %v569_v41 = vpop.f32.mrf.mxu1  ;;  %801 = vmatmul.mubr.f32.vlgmr.msra.gmra.mxu0 %v580_v31  ;;  %890 = vmatmul.mubr.f32.vlgmr.msra.gmra.mxu1 %v582_v0  ;;  %v942_v0 = vld [vmem:[%s1602_s5 + $0xa0] sm:$0xff]  ;;  %v924_v30 = vld [vmem:[%s1602_s5 + $0x10] sm:$0xff]  ;;  %v939_v31 = vld [vmem:[%s1602_s5 + $0x88] sm:$0xff] }
 0x116   : > { %v585_v42 = vmax.f32 %v477_v36, 0.0  ;;  %v587_v43 = vmax.f32 %v566_v37, 0.0  ;;  %v570_v44 = vadd.f32 %v569_v41, %v393_v14  ;;  %1146 = vmatpush3.msra.mxu0 %v937_v35  ;;  %1205 = vmatpush3.msra.mxu1 %v937_v35  ;;  %v481_v46 = vadd.f32 %v480_v40, %v385_v15  ;;  %v938_v33 = vld [vmem:[%s1602_s5 + $0x80] sm:$0xff] }
 0x117   : > { %v482_v47 = vpop.f32.mrf.mxu0  ;;  %v571_v48 = vpop.f32.mrf.mxu1  ;;  %1147 = vmatprep.subr.mxu0 %v952_v38  ;;  %1190 = vmatprep.subr.mxu1 %v952_v38  ;;  %v922_v34 = vld [vmem:[%s1602_s5] sm:$0xff] }
 0x118   : > { %v483_v50 = vadd.f32 %v482_v47, %v1470_v16  ;;  %v572_v51 = vadd.f32 %v571_v48, %v1472_v17  ;;  %806 = vmatprep.mubr.f32.mxu0 %v585_v42  ;;  %895 = vmatprep.mubr.f32.mxu1 %v587_v43  ;;  %v590_v53 = vmax.f32 %v570_v44, 0.0  ;;  %v588_v59 = vmax.f32 %v481_v46, 0.0  ;;  %v724_v35 = vld [vmem:[%s1601_s4] sm:$0x3] }
 0x119   : > { %v486_v54 = vpop.f32.mrf.mxu0  ;;  %v575_v55 = vpop.f32.mrf.mxu1  ;;  %807 = vmatmul.mubr.f32.gmra.mxu0 %v584_v45  ;;  %896 = vmatmul.mubr.f32.gmra.mxu1 %v586_v39  ;;  %v729_v36 = vrot.slane %v724_v35, %v384_v10  ;;  %v733_v37 = vrot.slane %v724_v35, %v388_v12 }
 0x11a   : > { %v589_v56 = vmax.f32 %v483_v50, 0.0  ;;  %v591_v57 = vmax.f32 %v572_v51, 0.0  ;;  %v576_v58 = vadd.f32 %v575_v55, %v393_v14  ;;  %1148 = vmatpush3.msra.mxu0 %v936_v49  ;;  %1206 = vmatpush3.msra.mxu1 %v936_v49  ;;  %v487_v60 = vadd.f32 %v486_v54, %v385_v15  ;;  %v948_v14 = vld [vmem:[%s1602_s5 + $0xd0] sm:$0xff] }
 0x11b   : > { %v488_v61 = vpop.f32.mrf.mxu0  ;;  %v577_v62 = vpop.f32.mrf.mxu1  ;;  %1149 = vmatprep.subr.mxu0 %v951_v52  ;;  %1191 = vmatprep.subr.mxu1 %v951_v52  ;;  %v932_v15 = vld [vmem:[%s1602_s5 + $0x50] sm:$0xff] }
 0x11c   : > { %v489_v1 = vadd.f32 %v488_v61, %v1470_v16  ;;  %v578_v2 = vadd.f32 %v577_v62, %v1472_v17  ;;  %812 = vmatprep.mubr.f32.mxu0 %v589_v56  ;;  %901 = vmatprep.mubr.f32.mxu1 %v591_v57  ;;  %v594_v4 = vmax.f32 %v576_v58, 0.0  ;;  %v592_v7 = vmax.f32 %v487_v60, 0.0  ;;  %v947_v16 = vld [vmem:[%s1602_s5 + $0xc8] sm:$0xff] }
 0x11d   : > { %813 = vmatmul.mubr.f32.gmra.mxu0 %v588_v59  ;;  %902 = vmatmul.mubr.f32.gmra.mxu1 %v590_v53  ;;  %v931_v17 = vld [vmem:[%s1602_s5 + $0x48] sm:$0xff] }
 0x11e   : > { %v593_v5 = vmax.f32 %v489_v1, 0.0  ;;  %v595_v6 = vmax.f32 %v578_v2, 0.0  ;;  %1150 = vmatpush3.msra.mxu0 %v935_v63  ;;  %1207 = vmatpush3.msra.mxu1 %v935_v63 }
 0x11f   : > { %1151 = vmatprep.subr.mxu0 %v950_v3  ;;  %1192 = vmatprep.subr.mxu1 %v950_v3 }
 0x120   : > { %818 = vmatprep.mubr.f32.mxu0 %v593_v5  ;;  %907 = vmatprep.mubr.f32.mxu1 %v595_v6 }
 0x121   : > { %819 = vmatmul.mubr.f32.gmra.mxu0 %v592_v7  ;;  %908 = vmatmul.mubr.f32.gmra.mxu1 %v594_v4 }
 0x122   : > { %1152 = vmatpush3.msra.mxu0 %v934_v9  ;;  %1208 = vmatpush3.msra.mxu1 %v934_v9 }
 0x123   : > { %1153 = vmatprep.subr.mxu0 %v949_v11  ;;  %1193 = vmatprep.subr.mxu1 %v949_v11 }
 0x124   : > { %1154 = vmatpush3.msra.mxu0 %v933_v13  ;;  %1209 = vmatpush3.msra.mxu1 %v933_v13 }
 0x125   : > { %1155 = vmatprep.subr.mxu0 %v948_v14  ;;  %1194 = vmatprep.subr.mxu1 %v948_v14 }
 0x126   : > { %1156 = vmatpush3.msra.mxu0 %v932_v15  ;;  %1210 = vmatpush3.msra.mxu1 %v932_v15 }
 0x127   : > { %1157 = vmatprep.subr.mxu0 %v947_v16  ;;  %1195 = vmatprep.subr.mxu1 %v947_v16  ;;  %v1142_v16 = vld [vmem:[%s1603_s6] ss:$0 sm:$0xff] }
 0x128   : > { %1158 = vmatpush3.msra.mxu0 %v931_v17  ;;  %1211 = vmatpush3.msra.mxu1 %v931_v17 }
 0x129   : > { %1159 = vmatprep.subr.mxu0 %v946_v18  ;;  %1196 = vmatprep.subr.mxu1 %v946_v18 }
 0x12a   : > { %1160 = vmatpush3.msra.mxu0 %v930_v19  ;;  %1212 = vmatpush3.msra.mxu1 %v930_v19 }
 0x12b   : > { %1161 = vmatprep.subr.mxu0 %v945_v20  ;;  %1197 = vmatprep.subr.mxu1 %v945_v20 }
 0x12c   : > { %1162 = vmatpush3.msra.mxu0 %v929_v21  ;;  %1213 = vmatpush3.msra.mxu1 %v929_v21 }
 0x12d   : > { %1163 = vmatprep.subr.mxu0 %v944_v22  ;;  %1198 = vmatprep.subr.mxu1 %v944_v22 }
 0x12e   : > { %1164 = vmatpush3.msra.mxu0 %v928_v23  ;;  %1214 = vmatpush3.msra.mxu1 %v928_v23 }
 0x12f   : > { %1165 = vmatprep.subr.mxu0 %v943_v24  ;;  %1199 = vmatprep.subr.mxu1 %v943_v24 }
 0x130   : > { %1166 = vmatpush3.msra.mxu0 %v927_v25  ;;  %1215 = vmatpush3.msra.mxu1 %v927_v25 }
 0x131   : > { %1167 = vmatprep.subr.mxu0 %v942_v0  ;;  %1200 = vmatprep.subr.mxu1 %v942_v0 }
 0x132   : > { %1168 = vmatpush3.msra.mxu0 %v926_v26  ;;  %1216 = vmatpush3.msra.mxu1 %v926_v26 }
 0x133   : > { %1169 = vmatprep.subr.mxu0 %v941_v27  ;;  %1201 = vmatprep.subr.mxu1 %v941_v27 }
 0x134   : > { %1170 = vmatpush3.msra.mxu0 %v925_v28  ;;  %1217 = vmatpush3.msra.mxu1 %v925_v28 }
 0x135   : > { %1171 = vmatprep.subr.mxu0 %v940_v29  ;;  %1202 = vmatprep.subr.mxu1 %v940_v29 }
 0x136   : > { %1172 = vmatpush3.msra.mxu0 %v924_v30  ;;  %1218 = vmatpush3.msra.mxu1 %v924_v30 }
 0x137   : > { %1173 = vmatprep.subr.mxu0 %v939_v31  ;;  %1203 = vmatprep.subr.mxu1 %v939_v31 }
 0x138   : > { %1174 = vmatpush3.msra.mxu0 %v923_v32  ;;  %1219 = vmatpush3.msra.mxu1 %v923_v32 }
 0x139   : > { %1175 = vmatprep.subr.mxu0 %v938_v33  ;;  %1204 = vmatprep.subr.mxu1 %v938_v33 }
 0x13a   : > { %1176 = vmatpush3.msra.mxu0 %v922_v34  ;;  %1220 = vmatpush3.msra.mxu1 %v922_v34 }
 0x1d5   : > { %v802_v38 = vpop.f32.mrf.mxu0  ;;  %v891_v39 = vpop.f32.mrf.mxu1 }
 0x1d6   : > { %v803_v40 = vadd.f32 %v802_v38, %v729_v36 }
 0x1d7   : > { %v804_v41 = vpop.f32.mrf.mxu0  ;;  %v893_v42 = vpop.f32.mrf.mxu1 }
 0x1d8   : > { %v805_v43 = vadd.f32 %v804_v41, %v733_v37  ;;  %v892_v44 = vadd.f32 %v891_v39, %v803_v40 }
 0x1d9   : > { %v808_v45 = vpop.f32.mrf.mxu0  ;;  %v897_v46 = vpop.f32.mrf.mxu1 }
 0x1da   : > { %v894_v47 = vadd.f32 %v893_v42, %v805_v43  ;;  %v809_v48 = vadd.f32 %v808_v45, %v729_v36  ;;  %v914_v53 = vmax.f32 %v892_v44, 0.0 }
 0x1db   : > { %v810_v49 = vpop.f32.mrf.mxu0  ;;  %v899_v50 = vpop.f32.mrf.mxu1 }
 0x1dc   : > { %v915_v51 = vmax.f32 %v894_v47, 0.0  ;;  %v811_v52 = vadd.f32 %v810_v49, %v733_v37  ;;  %v898_v10 = vadd.f32 %v897_v46, %v809_v48 }
 0x1dd   : > { %v814_v54 = vpop.f32.mrf.mxu0  ;;  %v903_v8 = vpop.f32.mrf.mxu1 }
 0x1de   : > { %v900_v12 = vadd.f32 %v899_v50, %v811_v52  ;;  %v815_v55 = vadd.f32 %v814_v54, %v729_v36  ;;  %1025 = vmatprep.mubr.f32.mxu0 %v915_v51  ;;  %v916_v60 = vmax.f32 %v898_v10, 0.0 }
 0x1df   : > { %v816_v56 = vpop.f32.mrf.mxu0  ;;  %v905_v57 = vpop.f32.mrf.mxu1  ;;  %1026 = vmatmul.mubr.f32.vlgmr.msra.gmra.mxu0 %v914_v53 }
 0x1e0   : > { %v917_v58 = vmax.f32 %v900_v12, 0.0  ;;  %v817_v59 = vadd.f32 %v816_v56, %v733_v37  ;;  %v904_v61 = vadd.f32 %v903_v8, %v815_v55 }
 0x1e1   : > { %v820_v62 = vpop.f32.mrf.mxu0  ;;  %v909_v63 = vpop.f32.mrf.mxu1 }
 0x1e2   : > { %v906_v1 = vadd.f32 %v905_v57, %v817_v59  ;;  %v821_v2 = vadd.f32 %v820_v62, %v729_v36  ;;  %1030 = vmatprep.mubr.f32.mxu0 %v917_v58  ;;  %v918_v6 = vmax.f32 %v904_v61, 0.0 }
 0x1e3   : > { %v822_v3 = vpop.f32.mrf.mxu0  ;;  %1031 = vmatmul.mubr.f32.gmra.mxu0 %v916_v60  ;;  %v911_v9 = vpop.f32.mrf.mxu1 }
 0x1e4   : > { %v919_v4 = vmax.f32 %v906_v1, 0.0  ;;  %v823_v5 = vadd.f32 %v822_v3, %v733_v37  ;;  %v910_v7 = vadd.f32 %v909_v63, %v821_v2 }
 0x1e6   : > { %v912_v11 = vadd.f32 %v911_v9, %v823_v5  ;;  %1035 = vmatprep.mubr.f32.mxu1 %v919_v4  ;;  %v920_v14 = vmax.f32 %v910_v7, 0.0 }
 0x1e7   : > { %1036 = vmatmul.mubr.f32.vlgmr.msra.gmra.mxu1 %v918_v6 }
 0x1e8   : > { %v921_v13 = vmax.f32 %v912_v11, 0.0 }
 0x1ea   : > { %1040 = vmatprep.mubr.f32.mxu1 %v921_v13 }
 0x1eb   : > { %1041 = vmatmul.mubr.f32.gmra.mxu1 %v920_v14 }
 0x29f   : > { %v1177_v15 = vpop.f32.mrf.mxu0 }
 0x2a1   : > { %v1178_v17 = vpop.f32.mrf.mxu0 }
 0x2a2   : > { %v1179_v18 = vadd.f32 %v1178_v17, %v1177_v15 }
 0x2a3   : > { %v1180_v19 = vpop.f32.mrf.mxu0 }
 0x2a4   : > { %v1028_v20 = vadd.f32 %v1179_v18, %v1142_v16 }
 0x2a5   : > { %v1181_v21 = vpop.f32.mrf.mxu0 }
 0x2a6   : > { %1047 = vst.msk [vmem:[%s310_s15] sm:$0xff] %vm1046_vm0, %v1028_v20  ;;  %v1182_v22 = vadd.f32 %v1181_v21, %v1180_v19 }
 0x2a7   : > { %v1183_v23 = vpop.f32.mrf.mxu1 }
 0x2a8   : > { %v1033_v24 = vadd.f32 %v1182_v22, %v1142_v16 }
 0x2a9   : > { %v1184_v25 = vpop.f32.mrf.mxu1 }
 0x2aa   : > { %1048 = vst.msk [vmem:[%s310_s15 + $0x8] sm:$0xff] %vm1046_vm0, %v1033_v24  ;;  %v1185_v0 = vadd.f32 %v1184_v25, %v1183_v23 }
 0x2ab   : > { %v1186_v26 = vpop.f32.mrf.mxu1 }
 0x2ac   : > { %v1038_v27 = vadd.f32 %v1185_v0, %v1142_v16 }
 0x2ad   : > { %v1187_v28 = vpop.f32.mrf.mxu1 }
 0x2ae   : > { %1049 = vst.msk [vmem:[%s310_s15 + $0x10] sm:$0xff] %vm1046_vm0, %v1038_v27  ;;  %v1188_v29 = vadd.f32 %v1187_v28, %v1186_v26 }
 0x2b0   : > { %v1043_v30 = vadd.f32 %v1188_v29, %v1142_v16 }
 0x2b2   : > { %1050 = vst.msk [vmem:[%s310_s15 + $0x18] sm:$0xff] %vm1046_vm0, %v1043_v30 }
 0x2b3 PF: > { %s19_s24 = sadd.s32 1, %s1321_s24  }
 0x2b4   : > { %p16_p3 = scmp.ge.s32.totalorder %s19_s24, 4  }
 0x2b6   :  { %18 = sbr.rel (!%p16_p3) target bundleno = 2 (0x2), region = 87 }
 0x2bb   :  { %1073 = vsyncpa [#allocation3], 1 }
 0x2bc   :  { %1075 = vsyncpa [#allocation3 + $0x1], 1 }
 0x2bd   :  { %1076 = vsyncpa [#allocation5], 1 }

</bundles_post_ra>
